<compile_context>
chip_gen: v7x
topology: tpu7x:2x2x1
jax: 0.10.0
libtpu: 0.0.40
codegen_flags: <defaults>
</compile_context>

<pallas_src>
import functools

import jax
import jax.numpy as jnp
from jax.experimental import pallas as pl
from jax.experimental.pallas import tpu as pltpu


# -----------------------------------------------------------------------------
# Fused Pallas kernel: the whole EdgeNetVAE forward pass
# -----------------------------------------------------------------------------
def fused_edgenet_vae_kernel(
    x_ref,        # (N, F)      node features
    edge_ec_ref,  # (E, 2)      int32 columns [src, dst]
    dst_row_ref,  # (1, E)      int32 dst as a lane row (for the scatter mask)
    slab_ref,     # (R, 128)    packed weights / biases / eps
    out_ref,      # (N, F + 2H) packed output: [reconstruction | mu | log_var]
    *, hidden_dim, offs,
):
    f32 = jnp.float32
    n_nodes = x_ref.shape[0]
    n_edges = edge_ec_ref.shape[0]

    def w(name):  # static slab slice -> load (zero-cost view, tiny load)
        r, nr, nc = offs[name]
        return slab_ref[r:r + nr, :nc]

    # ---- Graph structure ----------------------------------------------------
    src_col = edge_ec_ref[:, 0:1]                                  # (E, 1)
    dst_col = edge_ec_ref[:, 1:2]                                  # (E, 1)
    dst_row = dst_row_ref[...]                                     # (1, E)

    # Combined gather one-hot: row e has a 1 at col dst[e] (selects the x_i
    # projection) and a 1 at col N + src[e] (selects the x_j projection).
    iota_e2n = jax.lax.broadcasted_iota(jnp.int32, (n_edges, 2 * n_nodes), 1)
    comb_oh = jnp.logical_or(iota_e2n == dst_col,
                             iota_e2n == src_col + n_nodes).astype(f32)

    # Scatter mask (un-normalized) + in-degree; normalization is deferred.
    iota_ne = jax.lax.broadcasted_iota(jnp.int32, (n_nodes, n_edges), 0)
    agg_mask = (iota_ne == dst_row).astype(f32)                    # (N, E)
    deg = jnp.sum(agg_mask, axis=1, keepdims=True)                 # (N, 1)
    inv_deg = 1.0 / jnp.maximum(deg, 1.0)                          # exact (parity)

    # ---- BatchNorm1d (training-mode batch statistics, biased var, eps=1e-5) -
    x = x_ref[...]
    mean = jnp.mean(x, axis=0, keepdims=True)
    var = jnp.mean((x - mean) ** 2, axis=0, keepdims=True)
    h0 = (x - mean) * jax.lax.rsqrt(var + 1e-5) * w("gamma") + w("beta")

    # ---- Encoder EdgeConv: mean_j ReLU(ReLU([x_i, x_j-x_i] W1 + b1) W2 + b2)
    # Node-level projections, then ONE gather matmul:
    #   [x_i, x_j-x_i] @ W1 = x_i @ (W1_top - W1_bot) + x_j @ W1_bot
    p = jnp.concatenate(
        [jnp.dot(h0, w("enc_a"), preferred_element_type=f32),      # (N, big)
         jnp.dot(h0, w("enc_b"), preferred_element_type=f32)],     # (N, big)
        axis=0)                                                    # (2N, big)
    h = jnp.dot(comb_oh, p, preferred_element_type=f32) + w("enc_b1")  # (E, big)
    h = jnp.maximum(h, 0.0)
    h = jnp.maximum(
        jnp.dot(h, w("enc_w2"), preferred_element_type=f32) + w("enc_b2"), 0.0)
    h_enc = jnp.dot(agg_mask, h, preferred_element_type=f32) * inv_deg  # (N, big)

    # ---- Fused mu / log_var head + reparameterize ----------------------------
    heads = (jnp.dot(h_enc, w("head_w"), preferred_element_type=f32)
             + w("head_b"))                                        # (N, 2H)
    mu = heads[:, :hidden_dim]
    logvar = heads[:, hidden_dim:]
    z = mu + w("eps") * jnp.exp(0.5 * logvar)                      # (N, H)

    # ---- Decoder EdgeConv: mean_j (ReLU(ReLU([z_i, z_j-z_i] D1+b1) D2+b2) D3+b3)
    q = jnp.concatenate(
        [jnp.dot(z, w("dec_a"), preferred_element_type=f32),
         jnp.dot(z, w("dec_b"), preferred_element_type=f32)],
        axis=0)                                                    # (2N, big)
    g = jnp.dot(comb_oh, q, preferred_element_type=f32) + w("dec_b1")
    g = jnp.maximum(g, 0.0)
    g = jnp.maximum(
        jnp.dot(g, w("dec_w2"), preferred_element_type=f32) + w("dec_b2"), 0.0)
    g = jnp.dot(g, w("dec_w3"), preferred_element_type=f32) + w("dec_b3")
    recon = jnp.dot(agg_mask, g, preferred_element_type=f32) * inv_deg  # (N, F)

    # ---- Single packed output: [reconstruction | mu | log_var] ---------------
    f_dim = recon.shape[1]
    out_ref[:, :f_dim] = recon
    out_ref[:, f_dim:] = heads


# -----------------------------------------------------------------------------
# Wrapper: slab packing + one pallas_call for the full forward pass
# -----------------------------------------------------------------------------
def _pack_slab(pieces):
    """Pack small 2D f32 tensors into one (rows, 128) slab, 8-row aligned."""
    offs = {}
    blocks = []
    r = 0
    for name, arr in pieces:
        arr = jnp.asarray(arr, jnp.float32)
        nr, nc = arr.shape
        pr = ((nr + 7) // 8) * 8
        block = jnp.zeros((pr, 128), jnp.float32).at[:nr, :nc].set(arr)
        blocks.append(block)
        offs[name] = (r, nr, nc)
        r += pr
    return jnp.concatenate(blocks, axis=0), offs


def _vmem_spec():
    return pl.BlockSpec(memory_space=pltpu.MemorySpace.VMEM)


@jax.jit
def edge_net_vae_forward(params, x, edge_index, eps):
    n_nodes, input_dim = x.shape
    n_edges = edge_index.shape[1]
    hidden_dim = params["mu_w"].shape[1]

    # Split W1 of each EdgeConv so the (E, 2F)/(E, 2H) concat never exists:
    #   [a, b-a] @ W1 == a @ (W1_top - W1_bot) + b @ W1_bot
    ew1t = params["enc_w1"][:input_dim]
    ew1b = params["enc_w1"][input_dim:]
    dw1t = params["dec_w1"][:hidden_dim]
    dw1b = params["dec_w1"][hidden_dim:]
    # Merge mu / log_var heads into a single (big, 2*hidden) matmul.
    head_w = jnp.concatenate([params["mu_w"], params["var_w"]], axis=1)
    head_b = jnp.concatenate([params["mu_b"], params["var_b"]], axis=1)

    pieces = [
        ("gamma", params["bn_gamma"]), ("beta", params["bn_beta"]),
        ("enc_a", ew1t - ew1b), ("enc_b", ew1b), ("enc_b1", params["enc_b1"]),
        ("enc_w2", params["enc_w2"]), ("enc_b2", params["enc_b2"]),
        ("head_w", head_w), ("head_b", head_b),
        ("dec_a", dw1t - dw1b), ("dec_b", dw1b), ("dec_b1", params["dec_b1"]),
        ("dec_w2", params["dec_w2"]), ("dec_b2", params["dec_b2"]),
        ("dec_w3", params["dec_w3"]), ("dec_b3", params["dec_b3"]),
        ("eps", eps),
    ]
    slab, offs = _pack_slab(pieces)

    edge_i32 = edge_index.astype(jnp.int32)
    edge_ec = edge_i32.T                                  # (E, 2) cols [src, dst]
    dst_row = edge_i32[1].reshape(1, n_edges)             # (1, E)

    kernel = functools.partial(fused_edgenet_vae_kernel,
                               hidden_dim=hidden_dim, offs=offs)
    packed = pl.pallas_call(
        kernel,
        out_shape=jax.ShapeDtypeStruct(
            (n_nodes, input_dim + 2 * hidden_dim), jnp.float32),
        in_specs=[_vmem_spec() for _ in range(4)],
        out_specs=_vmem_spec(),
    )(x, edge_ec, dst_row, slab)

    out = packed[:, :input_dim]
    mu = packed[:, input_dim:input_dim + hidden_dim]
    log_var = packed[:, input_dim + hidden_dim:]
    return out, mu, log_var


# -----------------------------------------------------------------------------
# Parameter init (deterministic, PyTorch-Linear-style uniform bounds)
# -----------------------------------------------------------------------------
def init_linear(key, in_dim, out_dim):
    k_w, k_b = jax.random.split(key)
    bound = 1.0 / jnp.sqrt(jnp.float32(in_dim))
    w = jax.random.uniform(k_w, (in_dim, out_dim), jnp.float32, -bound, bound)
    b = jax.random.uniform(k_b, (1, out_dim), jnp.float32, -bound, bound)
    return w, b


def build_params(key, input_dim=4, big_dim=32, hidden_dim=2):
    keys = jax.random.split(key, 8)
    params = {}
    # encoder nn: Linear(2*input_dim, big), ReLU, Linear(big, big), ReLU
    params["enc_w1"], params["enc_b1"] = init_linear(keys[0], 2 * input_dim, big_dim)
    params["enc_w2"], params["enc_b2"] = init_linear(keys[1], big_dim, big_dim)
    # mu / var heads
    params["mu_w"], params["mu_b"] = init_linear(keys[2], big_dim, hidden_dim)
    params["var_w"], params["var_b"] = init_linear(keys[3], big_dim, hidden_dim)
    # decoder nn: Linear(2*hidden, big), ReLU, Linear(big, big), ReLU, Linear(big, input)
    params["dec_w1"], params["dec_b1"] = init_linear(keys[4], 2 * hidden_dim, big_dim)
    params["dec_w2"], params["dec_b2"] = init_linear(keys[5], big_dim, big_dim)
    params["dec_w3"], params["dec_b3"] = init_linear(keys[6], big_dim, input_dim)
    # batchnorm affine params (PyTorch init: gamma=1, beta=0)
    params["bn_gamma"] = jnp.ones((1, input_dim), jnp.float32)
    params["bn_beta"] = jnp.zeros((1, input_dim), jnp.float32)
    return params


# -----------------------------------------------------------------------------
# Main
# -----------------------------------------------------------------------------
if __name__ == "__main__":
    key = jax.random.PRNGKey(0)
    k_param, k_x, k_edge, k_eps = jax.random.split(key, 4)

    N_NODES = 8      # graph nodes
    N_EDGES = 16     # directed edges
    INPUT_DIM = 4
    BIG_DIM = 32
    HIDDEN_DIM = 2

    params = build_params(k_param, INPUT_DIM, BIG_DIM, HIDDEN_DIM)

    # Node features (data.x) and a small random directed graph (data.edge_index)
    x = jax.random.normal(k_x, (N_NODES, INPUT_DIM), jnp.float32)
    edge_index = jax.random.randint(k_edge, (2, N_EDGES), 0, N_NODES,
                                    dtype=jnp.int32)
    # Standard-normal noise for the reparameterization trick (torch.randn_like).
    eps = jax.random.normal(k_eps, (N_NODES, HIDDEN_DIM), jnp.float32)

    out, mu, log_var = edge_net_vae_forward(params, x, edge_index, eps)
    jax.block_until_ready((out, mu, log_var))

    assert out.shape == (N_NODES, INPUT_DIM)
    assert mu.shape == (N_NODES, HIDDEN_DIM)
    assert log_var.shape == (N_NODES, HIDDEN_DIM)
    assert bool(jnp.all(jnp.isfinite(out)))
    assert bool(jnp.all(jnp.isfinite(mu)))
    assert bool(jnp.all(jnp.isfinite(log_var)))
    print("KERNEL_OK")
</pallas_src>

<mosaic_0001>
module attributes {stable_mosaic.version = 11 : i64} {
  func.func @fused_edgenet_vae_kernel(%arg0: memref<8x4xf32, #tpu.memory_space<vmem>>, %arg1: memref<16x2xi32, #tpu.memory_space<vmem>>, %arg2: memref<1x16xi32, #tpu.memory_space<vmem>>, %arg3: memref<232x128xf32, #tpu.memory_space<vmem>>, %arg4: memref<8x8xf32, #tpu.memory_space<vmem>>) attributes {dimension_semantics = [], scalar_prefetch = 0 : i64, scratch_operands = 0 : i64, tpu.core_type = #tpu.core_type<tc>} {
    %c0 = arith.constant 0 : index
    %c0_0 = arith.constant 0 : index
    %0 = vector.load %arg1[%c0, %c0_0] : memref<16x2xi32, #tpu.memory_space<vmem>>, vector<16x1xi32>
    %c0_1 = arith.constant 0 : index
    %c1 = arith.constant 1 : index
    %1 = vector.load %arg1[%c0_1, %c1] : memref<16x2xi32, #tpu.memory_space<vmem>>, vector<16x1xi32>
    %c0_2 = arith.constant 0 : index
    %c0_3 = arith.constant 0 : index
    %2 = vector.load %arg2[%c0_2, %c0_3] : memref<1x16xi32, #tpu.memory_space<vmem>>, vector<1x16xi32>
    %3 = tpu.iota {dimensions = array<i32: 1>} : vector<16x16xi32>
    %4 = vector.broadcast %1 : vector<16x1xi32> to vector<16x16xi32>
    %5 = arith.cmpi eq, %3, %4 : vector<16x16xi32>
    %c8_i32 = arith.constant 8 : i32
    %6 = vector.broadcast %c8_i32 : i32 to vector<16x1xi32>
    %7 = arith.addi %0, %6 : vector<16x1xi32>
    %8 = vector.broadcast %7 : vector<16x1xi32> to vector<16x16xi32>
    %9 = arith.cmpi eq, %3, %8 : vector<16x16xi32>
    %10 = arith.ori %5, %9 : vector<16x16xi1>
    %11 = arith.extui %10 : vector<16x16xi1> to vector<16x16xi32>
    %12 = arith.sitofp %11 : vector<16x16xi32> to vector<16x16xf32>
    %13 = tpu.iota {dimensions = array<i32: 0>} : vector<8x16xi32>
    %14 = vector.broadcast %2 : vector<1x16xi32> to vector<8x16xi32>
    %15 = arith.cmpi eq, %13, %14 : vector<8x16xi32>
    %16 = arith.extui %15 : vector<8x16xi1> to vector<8x16xi32>
    %17 = arith.sitofp %16 : vector<8x16xi32> to vector<8x16xf32>
    %cst = arith.constant dense<0.000000e+00> : vector<8xf32>
    %18 = vector.multi_reduction <add>, %17, %cst [1] : vector<8x16xf32> to vector<8xf32>
    %19 = vector.shape_cast %18 : vector<8xf32> to vector<8x1xf32>
    %cst_4 = arith.constant 1.000000e+00 : f32
    %20 = vector.broadcast %cst_4 : f32 to vector<8x1xf32>
    %21 = arith.maximumf %19, %20 : vector<8x1xf32>
    %cst_5 = arith.constant 1.000000e+00 : f32
    %22 = vector.broadcast %cst_5 : f32 to vector<8x1xf32>
    %23 = arith.divf %22, %21 : vector<8x1xf32>
    %c0_6 = arith.constant 0 : index
    %c0_7 = arith.constant 0 : index
    %24 = vector.load %arg0[%c0_6, %c0_7] : memref<8x4xf32, #tpu.memory_space<vmem>>, vector<8x4xf32>
    %cst_8 = arith.constant dense<0.000000e+00> : vector<4xf32>
    %25 = vector.multi_reduction <add>, %24, %cst_8 [0] : vector<8x4xf32> to vector<4xf32>
    %26 = vector.shape_cast %25 : vector<4xf32> to vector<1x4xf32>
    %cst_9 = arith.constant 8.000000e+00 : f32
    %27 = vector.broadcast %cst_9 : f32 to vector<1x4xf32>
    %28 = arith.divf %26, %27 : vector<1x4xf32>
    %29 = vector.broadcast %28 : vector<1x4xf32> to vector<8x4xf32>
    %30 = arith.subf %24, %29 : vector<8x4xf32>
    %31 = arith.mulf %30, %30 : vector<8x4xf32>
    %cst_10 = arith.constant dense<0.000000e+00> : vector<4xf32>
    %32 = vector.multi_reduction <add>, %31, %cst_10 [0] : vector<8x4xf32> to vector<4xf32>
    %33 = vector.shape_cast %32 : vector<4xf32> to vector<1x4xf32>
    %cst_11 = arith.constant 8.000000e+00 : f32
    %34 = vector.broadcast %cst_11 : f32 to vector<1x4xf32>
    %35 = arith.divf %33, %34 : vector<1x4xf32>
    %36 = vector.broadcast %28 : vector<1x4xf32> to vector<8x4xf32>
    %37 = arith.subf %24, %36 : vector<8x4xf32>
    %cst_12 = arith.constant 9.99999974E-6 : f32
    %38 = vector.broadcast %cst_12 : f32 to vector<1x4xf32>
    %39 = arith.addf %35, %38 : vector<1x4xf32>
    %40 = math.rsqrt %39 : vector<1x4xf32>
    %41 = vector.broadcast %40 : vector<1x4xf32> to vector<8x4xf32>
    %42 = arith.mulf %37, %41 : vector<8x4xf32>
    %c0_13 = arith.constant 0 : index
    %c0_14 = arith.constant 0 : index
    %43 = vector.load %arg3[%c0_13, %c0_14] : memref<232x128xf32, #tpu.memory_space<vmem>>, vector<1x4xf32>
    %44 = vector.broadcast %43 : vector<1x4xf32> to vector<8x4xf32>
    %45 = arith.mulf %42, %44 : vector<8x4xf32>
    %c8 = arith.constant 8 : index
    %c0_15 = arith.constant 0 : index
    %46 = vector.load %arg3[%c8, %c0_15] : memref<232x128xf32, #tpu.memory_space<vmem>>, vector<1x4xf32>
    %47 = vector.broadcast %46 : vector<1x4xf32> to vector<8x4xf32>
    %48 = arith.addf %45, %47 : vector<8x4xf32>
    %c16 = arith.constant 16 : index
    %c0_16 = arith.constant 0 : index
    %49 = vector.load %arg3[%c16, %c0_16] : memref<232x128xf32, #tpu.memory_space<vmem>>, vector<4x32xf32>
    %cst_17 = arith.constant dense<0.000000e+00> : vector<8x32xf32>
    %50 = tpu.matmul %48, %49, %cst_17 {dimension_numbers = #tpu.dot_dimension_numbers<[1], [0], [0], [1], [0, 0, 1, 1], [], []>} : vector<8x4xf32>, vector<4x32xf32>, vector<8x32xf32> -> vector<8x32xf32>
    %c24 = arith.constant 24 : index
    %c0_18 = arith.constant 0 : index
    %51 = vector.load %arg3[%c24, %c0_18] : memref<232x128xf32, #tpu.memory_space<vmem>>, vector<4x32xf32>
    %cst_19 = arith.constant dense<0.000000e+00> : vector<8x32xf32>
    %52 = tpu.matmul %48, %51, %cst_19 {dimension_numbers = #tpu.dot_dimension_numbers<[1], [0], [0], [1], [0, 0, 1, 1], [], []>} : vector<8x4xf32>, vector<4x32xf32>, vector<8x32xf32> -> vector<8x32xf32>
    %53 = tpu.concatenate %50, %52 in 0 : vector<8x32xf32>, vector<8x32xf32> -> vector<16x32xf32>
    %cst_20 = arith.constant dense<0.000000e+00> : vector<16x32xf32>
    %54 = tpu.matmul %12, %53, %cst_20 {dimension_numbers = #tpu.dot_dimension_numbers<[1], [0], [0], [1], [0, 0, 1, 1], [], []>} : vector<16x16xf32>, vector<16x32xf32>, vector<16x32xf32> -> vector<16x32xf32>
    %c32 = arith.constant 32 : index
    %c0_21 = arith.constant 0 : index
    %55 = vector.load %arg3[%c32, %c0_21] : memref<232x128xf32, #tpu.memory_space<vmem>>, vector<1x32xf32>
    %56 = vector.broadcast %55 : vector<1x32xf32> to vector<16x32xf32>
    %57 = arith.addf %54, %56 : vector<16x32xf32>
    %cst_22 = arith.constant 0.000000e+00 : f32
    %58 = vector.broadcast %cst_22 : f32 to vector<16x32xf32>
    %59 = arith.maximumf %57, %58 : vector<16x32xf32>
    %c40 = arith.constant 40 : index
    %c0_23 = arith.constant 0 : index
    %60 = vector.load %arg3[%c40, %c0_23] : memref<232x128xf32, #tpu.memory_space<vmem>>, vector<32x32xf32>
    %cst_24 = arith.constant dense<0.000000e+00> : vector<16x32xf32>
    %61 = tpu.matmul %59, %60, %cst_24 {dimension_numbers = #tpu.dot_dimension_numbers<[1], [0], [0], [1], [0, 0, 1, 1], [], []>} : vector<16x32xf32>, vector<32x32xf32>, vector<16x32xf32> -> vector<16x32xf32>
    %c72 = arith.constant 72 : index
    %c0_25 = arith.constant 0 : index
    %62 = vector.load %arg3[%c72, %c0_25] : memref<232x128xf32, #tpu.memory_space<vmem>>, vector<1x32xf32>
    %63 = vector.broadcast %62 : vector<1x32xf32> to vector<16x32xf32>
    %64 = arith.addf %61, %63 : vector<16x32xf32>
    %cst_26 = arith.constant 0.000000e+00 : f32
    %65 = vector.broadcast %cst_26 : f32 to vector<16x32xf32>
    %66 = arith.maximumf %64, %65 : vector<16x32xf32>
    %cst_27 = arith.constant dense<0.000000e+00> : vector<8x32xf32>
    %67 = tpu.matmul %17, %66, %cst_27 {dimension_numbers = #tpu.dot_dimension_numbers<[1], [0], [0], [1], [0, 0, 1, 1], [], []>} : vector<8x16xf32>, vector<16x32xf32>, vector<8x32xf32> -> vector<8x32xf32>
    %68 = vector.broadcast %23 : vector<8x1xf32> to vector<8x32xf32>
    %69 = arith.mulf %67, %68 : vector<8x32xf32>
    %c80 = arith.constant 80 : index
    %c0_28 = arith.constant 0 : index
    %70 = vector.load %arg3[%c80, %c0_28] : memref<232x128xf32, #tpu.memory_space<vmem>>, vector<32x4xf32>
    %cst_29 = arith.constant dense<0.000000e+00> : vector<8x4xf32>
    %71 = tpu.matmul %69, %70, %cst_29 {dimension_numbers = #tpu.dot_dimension_numbers<[1], [0], [0], [1], [0, 0, 1, 1], [], []>} : vector<8x32xf32>, vector<32x4xf32>, vector<8x4xf32> -> vector<8x4xf32>
    %c112 = arith.constant 112 : index
    %c0_30 = arith.constant 0 : index
    %72 = vector.load %arg3[%c112, %c0_30] : memref<232x128xf32, #tpu.memory_space<vmem>>, vector<1x4xf32>
    %73 = vector.broadcast %72 : vector<1x4xf32> to vector<8x4xf32>
    %74 = arith.addf %71, %73 : vector<8x4xf32>
    %75 = vector.extract_strided_slice %74 {offsets = [0, 0], sizes = [8, 2], strides = [1, 1]} : vector<8x4xf32> to vector<8x2xf32>
    %76 = vector.extract_strided_slice %74 {offsets = [0, 2], sizes = [8, 2], strides = [1, 1]} : vector<8x4xf32> to vector<8x2xf32>
    %c224 = arith.constant 224 : index
    %c0_31 = arith.constant 0 : index
    %77 = vector.load %arg3[%c224, %c0_31] : memref<232x128xf32, #tpu.memory_space<vmem>>, vector<8x2xf32>
    %cst_32 = arith.constant 5.000000e-01 : f32
    %78 = vector.broadcast %cst_32 : f32 to vector<8x2xf32>
    %79 = arith.mulf %78, %76 : vector<8x2xf32>
    %80 = math.exp %79 : vector<8x2xf32>
    %81 = arith.mulf %77, %80 : vector<8x2xf32>
    %82 = arith.addf %75, %81 : vector<8x2xf32>
    %c120 = arith.constant 120 : index
    %c0_33 = arith.constant 0 : index
    %83 = vector.load %arg3[%c120, %c0_33] : memref<232x128xf32, #tpu.memory_space<vmem>>, vector<2x32xf32>
    %cst_34 = arith.constant dense<0.000000e+00> : vector<8x32xf32>
    %84 = tpu.matmul %82, %83, %cst_34 {dimension_numbers = #tpu.dot_dimension_numbers<[1], [0], [0], [1], [0, 0, 1, 1], [], []>} : vector<8x2xf32>, vector<2x32xf32>, vector<8x32xf32> -> vector<8x32xf32>
    %c128 = arith.constant 128 : index
    %c0_35 = arith.constant 0 : index
    %85 = vector.load %arg3[%c128, %c0_35] : memref<232x128xf32, #tpu.memory_space<vmem>>, vector<2x32xf32>
    %cst_36 = arith.constant dense<0.000000e+00> : vector<8x32xf32>
    %86 = tpu.matmul %82, %85, %cst_36 {dimension_numbers = #tpu.dot_dimension_numbers<[1], [0], [0], [1], [0, 0, 1, 1], [], []>} : vector<8x2xf32>, vector<2x32xf32>, vector<8x32xf32> -> vector<8x32xf32>
    %87 = tpu.concatenate %84, %86 in 0 : vector<8x32xf32>, vector<8x32xf32> -> vector<16x32xf32>
    %cst_37 = arith.constant dense<0.000000e+00> : vector<16x32xf32>
    %88 = tpu.matmul %12, %87, %cst_37 {dimension_numbers = #tpu.dot_dimension_numbers<[1], [0], [0], [1], [0, 0, 1, 1], [], []>} : vector<16x16xf32>, vector<16x32xf32>, vector<16x32xf32> -> vector<16x32xf32>
    %c136 = arith.constant 136 : index
    %c0_38 = arith.constant 0 : index
    %89 = vector.load %arg3[%c136, %c0_38] : memref<232x128xf32, #tpu.memory_space<vmem>>, vector<1x32xf32>
    %90 = vector.broadcast %89 : vector<1x32xf32> to vector<16x32xf32>
    %91 = arith.addf %88, %90 : vector<16x32xf32>
    %cst_39 = arith.constant 0.000000e+00 : f32
    %92 = vector.broadcast %cst_39 : f32 to vector<16x32xf32>
    %93 = arith.maximumf %91, %92 : vector<16x32xf32>
    %c144 = arith.constant 144 : index
    %c0_40 = arith.constant 0 : index
    %94 = vector.load %arg3[%c144, %c0_40] : memref<232x128xf32, #tpu.memory_space<vmem>>, vector<32x32xf32>
    %cst_41 = arith.constant dense<0.000000e+00> : vector<16x32xf32>
    %95 = tpu.matmul %93, %94, %cst_41 {dimension_numbers = #tpu.dot_dimension_numbers<[1], [0], [0], [1], [0, 0, 1, 1], [], []>} : vector<16x32xf32>, vector<32x32xf32>, vector<16x32xf32> -> vector<16x32xf32>
    %c176 = arith.constant 176 : index
    %c0_42 = arith.constant 0 : index
    %96 = vector.load %arg3[%c176, %c0_42] : memref<232x128xf32, #tpu.memory_space<vmem>>, vector<1x32xf32>
    %97 = vector.broadcast %96 : vector<1x32xf32> to vector<16x32xf32>
    %98 = arith.addf %95, %97 : vector<16x32xf32>
    %cst_43 = arith.constant 0.000000e+00 : f32
    %99 = vector.broadcast %cst_43 : f32 to vector<16x32xf32>
    %100 = arith.maximumf %98, %99 : vector<16x32xf32>
    %c184 = arith.constant 184 : index
    %c0_44 = arith.constant 0 : index
    %101 = vector.load %arg3[%c184, %c0_44] : memref<232x128xf32, #tpu.memory_space<vmem>>, vector<32x4xf32>
    %cst_45 = arith.constant dense<0.000000e+00> : vector<16x4xf32>
    %102 = tpu.matmul %100, %101, %cst_45 {dimension_numbers = #tpu.dot_dimension_numbers<[1], [0], [0], [1], [0, 0, 1, 1], [], []>} : vector<16x32xf32>, vector<32x4xf32>, vector<16x4xf32> -> vector<16x4xf32>
    %c216 = arith.constant 216 : index
    %c0_46 = arith.constant 0 : index
    %103 = vector.load %arg3[%c216, %c0_46] : memref<232x128xf32, #tpu.memory_space<vmem>>, vector<1x4xf32>
    %104 = vector.broadcast %103 : vector<1x4xf32> to vector<16x4xf32>
    %105 = arith.addf %102, %104 : vector<16x4xf32>
    %cst_47 = arith.constant dense<0.000000e+00> : vector<8x4xf32>
    %106 = tpu.matmul %17, %105, %cst_47 {dimension_numbers = #tpu.dot_dimension_numbers<[1], [0], [0], [1], [0, 0, 1, 1], [], []>} : vector<8x16xf32>, vector<16x4xf32>, vector<8x4xf32> -> vector<8x4xf32>
    %107 = vector.broadcast %23 : vector<8x1xf32> to vector<8x4xf32>
    %108 = arith.mulf %106, %107 : vector<8x4xf32>
    %c0_48 = arith.constant 0 : index
    %c0_49 = arith.constant 0 : index
    %109 = vector.load %arg4[%c0_48, %c0_49] : memref<8x8xf32, #tpu.memory_space<vmem>>, vector<8x4xf32>
    tpu.vector_store %arg4[%c0_48, %c0_49], %108 {strides = array<i32>} : memref<8x8xf32, #tpu.memory_space<vmem>>, vector<8x4xf32>,
    %c0_50 = arith.constant 0 : index
    %c4 = arith.constant 4 : index
    %110 = vector.load %arg4[%c0_50, %c4] : memref<8x8xf32, #tpu.memory_space<vmem>>, vector<8x4xf32>
    tpu.vector_store %arg4[%c0_50, %c4], %74 {strides = array<i32>} : memref<8x8xf32, #tpu.memory_space<vmem>>, vector<8x4xf32>,
    return
  }
}

</mosaic_0001>

<bundles_post_ra>
// kernel: edge_net_vae_forward.1
= control target key start
LH: loop header
LB: loop body
LE: loop exit
PB: predicated region body
PF: predicated region fallthrough
CT: control target
= control target key end

     0   :  { %vm102_vm0 = vcmask 1043456   ;;  %vm63_vm1 = vcmask 31744   ;;  %v1327_v0 = vmov 0.0   ;;  %vm1328_vm2 = vmmov 0   ;;  %s1333_s25 = smov 4   ;;  %s1525_s3 = inlined_call_operand.vmem [shape: f32[232,128], index: 3, kind: input, shape index: {}]   ;;  %s1526_s0 = inlined_call_operand.vmem [shape: f32[8,4], index: 0, kind: input, shape index: {}]   ;;  %s1527_s1 = inlined_call_operand.vmem [shape: s32[16,2], index: 1, kind: input, shape index: {}]   ;;  %s1528_s2 = inlined_call_operand.vmem [shape: s32[1,16], index: 2, kind: input, shape index: {}]   ;;  %s1529_s4 = inlined_call_operand.vmem [shape: f32[8,8], index: 4, kind: output, shape index: {}]  }
   0x1   :  { %1174 = vmatprep.subr.mxu0 %v1327_v0  ;;  %1179 = vmatprep.subr.mxu1 %v1327_v0  ;;  %v98_v1 = vld [vmem:[%s1525_s3 + $0x10] sm:$0xf]  ;;  %v176_v2 = vld [vmem:[%s1525_s3 + $0x18] sm:$0xf]  ;;  %v62_v3 = vld [vmem:[%s1526_s0] sm:$0xff]  ;;  %v1329_v8 = vmov 1   ;;  %v20_v35 = vlaneseq }
   0x2   :  { %1175 = vmatpush3.msk.msra.mxu0 %vm102_vm0, %v98_v1  ;;  %1176 = vmatprep.mubr.msk.f32.mxu0 %vm1328_vm2, %v1327_v0  ;;  %v64_v4 = vsel %vm63_vm1, %v62_v3, 0.0  ;;  %v17_v5 = vld [vmem:[%s1527_s1] sm:$0xff]  ;;  %v18_v7 = vld [vmem:[%s1527_s1 + $0x8] sm:$0xff]  ;;  %v1330_v14 = vmov 0   ;;  %vm55_vm5 = vcmask 130048   ;;  %v339_v41 = vld [vmem:[%s1525_s3 + $0x30] sm:$0xff] }
   0x3   :  { %1180 = vmatpush3.msk.msra.mxu1 %vm102_vm0, %v176_v2  ;;  %1181 = vmatprep.mubr.msk.f32.mxu1 %vm1328_vm2, %v1327_v0  ;;  %v65_v6 = vrot.slane %v64_v4, 4  ;;  %v30_v10 = vadd.s32 8, %v17_v5  ;;  %v31_v11 = vadd.s32 8, %v18_v7  ;;  %v1100_v30 = vld [vmem:[%s1525_s3] ss:$0 sm:$0xff]  ;;  %v21_v36 = vand.u32 127, %v20_v35 }
   0x4   :  { %1317 = vset.pattern.permute.xlu0 %v1329_v8  ;;  %1319 = vset.pattern.permute.xlu1 %v1329_v8  ;;  %v1101_v32 = vld [vmem:[%s1525_s3 + $0x8] ss:$0 sm:$0xff]  ;;  %v340_v51 = vld [vmem:[%s1525_s3 + $0x38] sm:$0xff]  ;;  %v341_v52 = vld [vmem:[%s1525_s3 + $0x40] sm:$0xff]  ;;  %vm347_vm10 = vcmask 261120   ;;  %v1331_v61 = vmov 0.0|0.0  }
   0x5   :  { %v66_v9 = vadd.f32 %v65_v6, %v64_v4  ;;  %23 = vperm.xlu0 %1317, %v17_v5   ;;  %26 = vperm.xlu1 %1319, %v18_v7   ;;  %v338_v40 = vld [vmem:[%s1525_s3 + $0x28] sm:$0xff]  ;;  %v1274_v53 = vpack.c.bf16 %v341_v52, %v340_v51  ;;  %v1106_v54 = vld [vmem:[%s1525_s3 + $0x20] ss:$0 sm:$0xff]  ;;  %v47_v62 = vshrl.u32 %v20_v35, 7  ;;  %vm602_vm12 = vcmask 1041408   ;;  %s1332_s1 = smov 126  }
   0x6   :  { %v1270_v42 = vpack.c.bf16 %v339_v41, %v338_v40  ;;  %v1098_v63 = vld [vmem:[%s1528_s2] ss:$0 sm:$0xff]  ;;  %vm598_vm13 = vcmask 15360   ;;  %vm1090_vm14 = vcmask 64544  }
   0x7   :  { %v67_v12 = vrot.slane %v66_v9, 2  ;;  %vm52_vm11 = vcmp.eq.s32.totalorder %v47_v62, %v1098_v63  ;;  %v676_v35 = vld [vmem:[%s1525_s3 + $0x80] sm:$0x3] }
   0x8   :  { %1271 = vmatprep.subr.bf16.mxu1 %v1270_v42  ;;  %v1427_v1 = vsel %vm52_vm11, 1.0, %v1327_v0 }
   0x9   :  { %v68_v13 = vadd.f32 %v67_v12, %v66_v9  ;;  %1318 = vset.pattern.permute.xlu0 %v1330_v14  ;;  %1320 = vset.pattern.permute.xlu1 %v1330_v14  ;;  %v56_v2 = vsel %vm55_vm5, %v1427_v1, 0.0  ;;  %v507_v14 = vld [vmem:[%s1525_s3 + $0x60] sm:$0xff] }
   0xa   :  { %33 = vperm.xlu0 %1318, %v30_v10   ;;  %36 = vperm.xlu1 %1320, %v31_v11   ;;  %v505_v10 = vld [vmem:[%s1525_s3 + $0x50] sm:$0xff]  ;;  %v506_v11 = vld [vmem:[%s1525_s3 + $0x58] sm:$0xff] }
   0xb   :  { %v69_v15 = vrot.slane %v68_v13, 1 }
   0xd   :  { %v70_v16 = vadd.f32 %v69_v15, %v68_v13  ;;  %v1282_v13 = vpack.c.bf16 %v506_v11, %v505_v10  ;;  %v508_v15 = vld [vmem:[%s1525_s3 + $0x68] sm:$0xff] }
   0xf   :  { %v72_v17 = vmul.f32 0.125, %v70_v16  ;;  %v1285_v16 = vpack.c.bf16 %v508_v15, %v507_v14 }
  0x11   :  { %v73_v18 = vsub.f32 %v62_v3, %v72_v17  ;;  %v1109_v3 = vld [vmem:[%s1525_s3 + $0x48] ss:$0 sm:$0xff] }
  0x13   :  { %v74_v19 = vmul.f32 %v73_v18, %v73_v18 }
  0x15   :  { %v75_v20 = vsel %vm63_vm1, %v74_v19, 0.0 }
  0x16   :  { %v76_v21 = vrot.slane %v75_v20, 4 }
  0x18   :  { %v77_v22 = vadd.f32 %v76_v21, %v75_v20 }
  0x1a   :  { %v78_v23 = vrot.slane %v77_v22, 2 }
  0x1c   :  { %v79_v24 = vadd.f32 %v78_v23, %v77_v22  ;;  %v1113_v23 = vld [vmem:[%s1525_s3 + $0x70] ss:$0 sm:$0xff] }
  0x1e   :  { %v80_v25 = vrot.slane %v79_v24, 1 }
  0x20   :  { %v81_v26 = vadd.f32 %v80_v25, %v79_v24 }
  0x22   :  { %v82_v27 = vmul.f32 0.125, %v81_v26 }
  0x24   :  { %v83_v28 = vadd.f32 1e-05, %v82_v27 }
  0x26   :  { %1321 = vrsqrt.f32 %v83_v28 }
  0x2e   :  { %57 = vadd.xlane.f32.xlu1 %v56_v2 }
  0x30   :  { %v1322_v29 = vpop.eup %1321 }
  0x31   :  { %v85_v31 = vmul.f32 %v1322_v29, %v73_v18  ;;  %v597_v29 = vld [vmem:[%s1525_s3 + $0x78] sm:$0x3] }
  0x33   :  { %v91_v33 = vmul.f32 %v1100_v30, %v85_v31  ;;  %v587_v31 = vld [vmem:[%s1525_s3 + $0xe0] sm:$0xff] }
  0x35   :  { %v97_v34 = vadd.f32 %v1101_v32, %v91_v33 }
  0x37   :  { %1177 = vmatmul.mubr.msk.f32.vlgmr.msra.gmra.mrb[0].mxu0 %vm63_vm1, %v97_v34  ;;  %1182 = vmatmul.mubr.msk.f32.vlgmr.msra.gmra.mrb[0].mxu1 %vm63_vm1, %v97_v34 }
  0x38   :  { %1273 = vmatpush3.bf16.msra.mxu1 %v1270_v42 }
  0x39   :  { %1275 = vmatprep.subr.bf16.mxu1 %v1274_v53 }
  0x3c   :  { %1277 = vmatpush3.bf16.msra.mxu1 %v1274_v53 }
  0x3d   :  { %1220 = vmatprep.subr.mxu1 %v1327_v0 }
  0x84   :  { %v24_v37 = vpop.permute.xlu0 %23  ;;  %v27_v43 = vpop.permute.xlu1 %26 }
  0x85   :  { %vm28_vm3 = vcmp.eq.s32.totalorder %v21_v36, %v24_v37  ;;  %vm29_vm7 = vcmp.eq.s32.totalorder %v21_v36, %v27_v43  ;;  %v833_v37 = vld [vmem:[%s1525_s3 + $0x98] sm:$0xff] }
  0x89   :  { %v34_v38 = vpop.permute.xlu0 %33  ;;  %v37_v44 = vpop.permute.xlu1 %36 }
  0x8a   :  { %vm38_vm4 = vcmp.eq.s32.totalorder %v21_v36, %v34_v38  ;;  %vm39_vm8 = vcmp.eq.s32.totalorder %v21_v36, %v37_v44  ;;  %v832_v36 = vld [vmem:[%s1525_s3 + $0x90] sm:$0xff]  ;;  %v834_v44 = vld [vmem:[%s1525_s3 + $0xa0] sm:$0xff] }
  0x8b   :  { %vm40_vm6 = vmor %vm28_vm3, %vm38_vm4  ;;  %v1291_v38 = vpack.c.bf16 %v833_v37, %v832_v36 }
  0x8c   :  { %v1391_v39 = vsel %vm40_vm6, 1.0, %v1327_v0  ;;  %vm41_vm9 = vmor %vm29_vm7, %vm39_vm8 }
  0x8d   :  { %1188 = vmatprep.mubr.msk.f32.mxu0 %vm55_vm5, %v1391_v39  ;;  %v1402_v50 = vsel %vm41_vm9, 1.0, %v1327_v0 }
  0xbb   :  { %v58_v17 = vpop.xlane.xlu1 %57 }
  0xbc   :  { %v59_v18 = vmax.f32 %v58_v17, 1.0 }
  0xbe   :  { %1323 = vrcp.f32 %v59_v18 }
  0xc8   :  { %v1452_v19 = vpop.eup %1323 }
 0x10a   :  { %v172_v45 = vpop.f32.mrb[0].mxu0  ;;  %v246_v46 = vpop.f32.mrb[0].mxu1 }
 0x10b   :  { %v1266_v47 = vpack.c.bf16 %v246_v46, %v172_v45  ;;  %v1178_v48 = vpop.f32.mrb[1].mxu0  ;;  %v1183_v49 = vpop.f32.mrb[1].mxu1  ;;  %v835_v45 = vld [vmem:[%s1525_s3 + $0xa8] sm:$0xff] }
 0x10c   :  { %v1295_v46 = vpack.c.bf16 %v835_v45, %v834_v44  ;;  %v925_v48 = vld [vmem:[%s1525_s3 + $0xc0] sm:$0xff] }
 0x10d   :  { %1267 = vmatprep.subr.bf16.mxu0 %v1266_v47 }
 0x10e   :  { %1269 = vmatpush3.bf16.msra.mxu0 %v1266_v47  ;;  %v924_v47 = vld [vmem:[%s1525_s3 + $0xb8] sm:$0xff] }
 0x10f   :  { %1278 = vmatprep.subr.bf16.mxu0 %v1331_v61  ;;  %v1299_v49 = vpack.c.bf16 %v925_v48, %v924_v47 }
 0x111   :  { %1189 = vmatmul.mubr.msk.f32.vlgmr.msra.gmra.mrb[2].mxu0 %vm55_vm5, %v1402_v50 }
 0x112   :  { %1206 = vmatprep.mubr.msk.f32.mxu0 %vm1328_vm2, %v1327_v0 }
 0x1e4   :  { %v1190_v55 = vpop.f32.mrb[2].mxu0 }
 0x1e5   :  { %v333_v56 = vadd.f32 %v1190_v55, %v1106_v54  ;;  %v327_v57 = vpop.f32.mrb[3].mxu0 }
 0x1e6   :  { %v328_v58 = vadd.f32 %v1106_v54, %v327_v57  ;;  %v926_v57 = vld [vmem:[%s1525_s3 + $0xc8] sm:$0xff] }
 0x1e7   :  { %v337_v60 = vmax.f32 %v333_v56, 0.0 }
 0x1e8   :  { %v336_v59 = vmax.f32 %v328_v58, 0.0  ;;  %v927_v58 = vld [vmem:[%s1525_s3 + $0xd0] sm:$0xff] }
 0x1ea   :  { %1199 = vmatprep.mubr.msk.f32.mxu1 %vm347_vm10, %v336_v59  ;;  %v1303_v59 = vpack.c.bf16 %v927_v58, %v926_v57 }
 0x1eb   :  { %1200 = vmatmul.mubr.msk.f32.vlgmr.msra.gmra.mrb[2].mxu1 %vm347_vm10, %v337_v60  ;;  %v1122_v60 = vld [vmem:[%s1525_s3 + $0xb0] ss:$0 sm:$0xff] }
 0x1ec   :  { %1222 = vmatprep.mubr.msk.f32.mxu1 %vm1328_vm2, %v1327_v0  ;;  %1221 = vmatpush3.msk.msra.mxu1 %vm602_vm12, %v597_v29 }
 0x1ed   :  { %1225 = vmatprep.subr.mxu1 %v1327_v0 }
 0x2be   :  { %v1201_v4 = vpop.f32.mrb[2].mxu1 }
 0x2bf   :  { %v426_v5 = vadd.f32 %v1201_v4, %v1109_v3  ;;  %v420_v6 = vpop.f32.mrb[3].mxu1  ;;  %v1125_v4 = vld [vmem:[%s1525_s3 + $0xd8] ss:$0 sm:$0xff] }
 0x2c0   :  { %v421_v7 = vadd.f32 %v1109_v3, %v420_v6 }
 0x2c1   :  { %v430_v8 = vmax.f32 %v426_v5, 0.0 }
 0x2c2   :  { %v429_v9 = vmax.f32 %v421_v7, 0.0 }
 0x2c4   :  { %v1279_v12 = vpack.c.bf16 %v430_v8, %v429_v9 }
 0x2c6   :  { %1280 = vmatpush3.bf16.msra.mxu0 %v1279_v12 }
 0x2c7   :  { %1281 = vmatprep.subr.bf16.mxu0 %v1331_v61 }
 0x2c9   :  { %1207 = vmatmul.mubr.msk.f32.vlgmr.msra.gmra.mrb[4].mxu0 %vm55_vm5, %v1427_v1 }
 0x2ca   :  { %1283 = vmatpush3.bf16.msra.mxu0 %v1282_v13  ;;  %1217 = vmatprep.mubr.msk.f32.mxu0 %vm1328_vm2, %v1327_v0 }
 0x2cb   :  { %1284 = vmatprep.subr.bf16.mxu0 %v1331_v61 }
 0x2ce   :  { %1286 = vmatpush3.bf16.msra.mxu0 %v1285_v16 }
 0x39c   :  { %v500_v20 = vpop.f32.mrb[4].mxu0 }
 0x39d   :  { %v504_v21 = vmul.f32 %v1452_v19, %v500_v20  ;;  %v1208_v22 = vpop.f32.mrb[5].mxu0 }
 0x39f   :  { %1218 = vmatmul.mubr.msk.f32.vlgmr.msra.gmra.mrb[6].mxu0 %vm347_vm10, %v504_v21 }
 0x3a0   :  { %1234 = vmatprep.mubr.msk.f32.mxu0 %vm55_vm5, %v1391_v39 }
 0x472   :  { %v583_v24 = vpop.f32.mrb[6].mxu0 }
 0x473   :  { %v584_v25 = vadd.f32 %v1113_v23, %v583_v24  ;;  %v1219_v26 = vpop.f32.mrb[7].mxu0 }
 0x475   :  { %v588_v27 = vmul.f32 0.5, %v584_v25 }
 0x477   :  { %v589_v28 = vmul.f32 1.442695, %v588_v27 }
 0x479   :  { %1325 = vpow2.f32 %v589_v28 }
 0x483   :  { %v1326_v30 = vpop.eup %1325 }
 0x484   :  { %592 = vrot.lane.b32.xlu0 %v1326_v30, %s1332_s1 }
 0x488   :  { %1087 = vrot.lane.b32.xlu0 %v584_v25, %s1333_s25 }
 0x4f6   :  { %v593_v32 = vpop.permute.xlu0 %592 }
 0x4f7   :  { %v595_v33 = vmul.f32 %v593_v32, %v587_v31 }
 0x4f9   :  { %v596_v34 = vadd.f32 %v595_v33, %v584_v25 }
 0x4fa   :  { %v1088_v13 = vpop.permute.xlu0 %1087 }
 0x4fb   :  { %1223 = vmatmul.mubr.msk.f32.vlgmr.msra.gmra.mrb[4].mxu1 %vm598_vm13, %v596_v34 }
 0x4fc   :  { %1226 = vmatpush3.msk.msra.mxu1 %vm602_vm12, %v676_v35  ;;  %1227 = vmatprep.mubr.msk.f32.mxu1 %vm1328_vm2, %v1327_v0 }
 0x4fd   :  { %1292 = vmatprep.subr.bf16.mxu1 %v1291_v38 }
 0x4ff   :  { %1228 = vmatmul.mubr.msk.f32.vlgmr.msra.gmra.mrb[6].mxu1 %vm598_vm13, %v596_v34 }
 0x500   :  { %1294 = vmatpush3.bf16.msra.mxu1 %v1291_v38 }
 0x501   :  { %1296 = vmatprep.subr.bf16.mxu1 %v1295_v46 }
 0x504   :  { %1298 = vmatpush3.bf16.msra.mxu1 %v1295_v46 }
 0x505   :  { %1307 = vmatprep.subr.bf16.mxu1 %v1331_v61 }
 0x5ce   :  { %v672_v39 = vpop.f32.mrb[4].mxu1 }
 0x5cf   :  { %v1224_v40 = vpop.f32.mrb[5].mxu1 }
 0x5d2   :  { %v746_v41 = vpop.f32.mrb[6].mxu1 }
 0x5d3   :  { %v1287_v42 = vpack.c.bf16 %v746_v41, %v672_v39  ;;  %v1229_v43 = vpop.f32.mrb[7].mxu1 }
 0x5d5   :  { %1288 = vmatprep.subr.bf16.mxu0 %v1287_v42 }
 0x5d6   :  { %1290 = vmatpush3.bf16.msra.mxu0 %v1287_v42 }
 0x5d7   :  { %1300 = vmatprep.subr.bf16.mxu0 %v1299_v49 }
 0x5d9   :  { %1235 = vmatmul.mubr.msk.f32.vlgmr.msra.gmra.mrb[8].mxu0 %vm55_vm5, %v1402_v50  ;;  %v1119_v50 = vld [vmem:[%s1525_s3 + $0x88] ss:$0 sm:$0xff] }
 0x5da   :  { %1302 = vmatpush3.bf16.msra.mxu0 %v1299_v49 }
 0x5db   :  { %1304 = vmatprep.subr.bf16.mxu0 %v1303_v59 }
 0x5de   :  { %1306 = vmatpush3.bf16.msra.mxu0 %v1303_v59 }
 0x6ac   :  { %v1236_v51 = vpop.f32.mrb[8].mxu0 }
 0x6ad   :  { %v827_v52 = vadd.f32 %v1236_v51, %v1119_v50  ;;  %v821_v53 = vpop.f32.mrb[9].mxu0 }
 0x6ae   :  { %v822_v54 = vadd.f32 %v1119_v50, %v821_v53 }
 0x6af   :  { %v831_v56 = vmax.f32 %v827_v52, 0.0 }
 0x6b0   :  { %v830_v55 = vmax.f32 %v822_v54, 0.0 }
 0x6b2   :  { %1245 = vmatprep.mubr.msk.f32.mxu1 %vm347_vm10, %v830_v55 }
 0x6b3   :  { %1246 = vmatmul.mubr.msk.f32.vlgmr.msra.gmra.mrb[8].mxu1 %vm347_vm10, %v831_v56 }
 0x6b4   :  { %1263 = vmatprep.mubr.msk.f32.mxu1 %vm1328_vm2, %v1327_v0 }
 0x786   :  { %v1247_v61 = vpop.f32.mrb[8].mxu1 }
 0x787   :  { %v919_v62 = vadd.f32 %v1247_v61, %v1122_v60  ;;  %v913_v63 = vpop.f32.mrb[9].mxu1 }
 0x788   :  { %v914_v2 = vadd.f32 %v1122_v60, %v913_v63 }
 0x789   :  { %v923_v3 = vmax.f32 %v919_v62, 0.0 }
 0x78a   :  { %v922_v0 = vmax.f32 %v914_v2, 0.0 }
 0x78c   :  { %1256 = vmatprep.mubr.msk.f32.mxu0 %vm347_vm10, %v922_v0 }
 0x78d   :  { %1257 = vmatmul.mubr.msk.f32.vlgmr.msra.gmra.mrb[10].mxu0 %vm347_vm10, %v923_v3 }
 0x860   :  { %v1258_v5 = vpop.f32.mrb[10].mxu0 }
 0x861   :  { %v1011_v6 = vadd.f32 %v1258_v5, %v1125_v4  ;;  %v1005_v7 = vpop.f32.mrb[11].mxu0 }
 0x862   :  { %v1006_v8 = vadd.f32 %v1125_v4, %v1005_v7 }
 0x864   :  { %v1308_v9 = vpack.c.bf16 %v1011_v6, %v1006_v8 }
 0x866   :  { %1309 = vmatpush3.bf16.msra.mxu1 %v1308_v9 }
 0x869   :  { %1264 = vmatmul.mubr.msk.f32.vlgmr.msra.gmra.mrb[10].mxu1 %vm55_vm5, %v1427_v1 }
 0x93c   :  { %v1080_v10 = vpop.f32.mrb[10].mxu1 }
 0x93d   :  { %v1084_v11 = vmul.f32 %v1452_v19, %v1080_v10  ;;  %v1265_v12 = vpop.f32.mrb[11].mxu1 }
 0x93f   :  { %1085 = vst.msk [vmem:[%s1529_s4] sm:$0xff] %vm63_vm1, %v1084_v11 }
 0x940   :  { %1091 = vst.msk [vmem:[%s1529_s4] sm:$0xff] %vm1090_vm14, %v1088_v13 }

</bundles_post_ra>
